<compile_context>
chip_gen: v7x
topology: tpu7x:2x2x1
jax: 0.10.0
libtpu: 0.0.40
codegen_flags: <defaults>
</compile_context>

<pallas_src>
import math

import jax
import jax.numpy as jnp
from jax.experimental import pallas as pl
from jax.experimental.pallas import tpu as pltpu

PLAYLISTS_SIZE = 115071
ITEM_SIZE = 40000


def gmf_kernel(p_ref, i_ref, y_ref):
    # p_ref / i_ref: [tb, D] gathered embedding rows (f32 or bf16).
    # y_ref:         [1, tb] f32, lane-dense row of per-row dot products.
    p = p_ref[...].astype(jnp.float32)
    it = i_ref[...].astype(jnp.float32)
    prod = p * it                                            # [tb, D] full VPU elementwise
    d = p_ref.shape[1]
    ones = jnp.ones((1, d), dtype=jnp.float32)
    # Row-wise sum, laid out lane-dense: (1, D) @ (tb, D).T -> (1, tb).
    # Same `dot(a, b.T)` structure as flash/paged-attention kernels; MXU is idle
    # here anyway, and the result needs no in-kernel relayout before the store.
    y_ref[...] = jnp.dot(ones, prod.T, preferred_element_type=jnp.float32)


def gmf_forward(x_idx, playlist_emb, item_emb, w1=None, b1=None, w2=None, b2=None,
                *, tb=8192, use_bf16=False):
    """x_idx: int32 [B, 2] of (playlist_id, item_id). Returns y: float32 [B, 1].

    w1/b1/w2/b2 are accepted for interface parity with the torch module but are
    unused: the fc1/selu/fc2 branch never contributes to the returned value.
    """
    B = int(x_idx.shape[0])
    D = int(playlist_emb.shape[1])
    bytes_per = 2 if use_bf16 else 4

    # --- tile selection -------------------------------------------------------
    # Lane multiple of 128; big enough to amortize ~0.35us/step; capped so
    # double-buffered inputs (2 arrays x 2 buffers) stay around ~8 MiB of VMEM,
    # comfortably inside the scoped-VMEM default on v5e/v6e and v7x's 64 MiB.
    tb = max(128, (int(tb) // 128) * 128)
    vmem_cap_rows = (8 * 1024 * 1024) // (2 * 2 * D * bytes_per)
    vmem_cap_rows = max(128, (vmem_cap_rows // 128) * 128)
    tb = min(tb, vmem_cap_rows)

    B128 = pl.cdiv(B, 128) * 128
    if B128 >= 256:
        # Guarantee >= 2 grid steps so the "parallel" axis shards across both
        # v7x TensorCores even for moderate batches.
        half = max(128, ((B128 // 2) // 128) * 128)
        tb_eff = min(tb, half)
    else:
        tb_eff = min(tb, B128)

    Bp = pl.cdiv(B, tb_eff) * tb_eff
    grid = (Bp // tb_eff,)

    # --- gather (plain-JAX glue; data-dependent) ------------------------------
    # Pad the cheap int32 indices, not the gathered float rows. Index 0 is a
    # valid row; padded outputs are stripped at the end.
    if Bp != B:
        x_idx = jnp.pad(x_idx, ((0, Bp - B), (0, 0)))

    emb_dtype = jnp.bfloat16 if use_bf16 else playlist_emb.dtype
    p = jnp.take(playlist_emb, x_idx[:, 0], axis=0).astype(emb_dtype)   # [Bp, D]
    it = jnp.take(item_emb, x_idx[:, 1], axis=0).astype(emb_dtype)      # [Bp, D]

    bytes_accessed = 2 * Bp * D * bytes_per + Bp * 4

    y_row = pl.pallas_call(
        gmf_kernel,
        out_shape=jax.ShapeDtypeStruct((1, Bp), jnp.float32),
        grid_spec=pltpu.PrefetchScalarGridSpec(
            num_scalar_prefetch=0,
            grid=grid,
            in_specs=[
                # D (=32) is the full last dim -> legal block, fully contiguous DMA.
                pl.BlockSpec((tb_eff, D), lambda i: (i, 0)),   # playlist rows
                pl.BlockSpec((tb_eff, D), lambda i: (i, 0)),   # item rows
            ],
            out_specs=pl.BlockSpec((1, tb_eff), lambda i: (0, i)),  # lane-dense row
        ),
        compiler_params=pltpu.CompilerParams(dimension_semantics=("parallel",)),
        cost_estimate=pl.CostEstimate(
            flops=2 * Bp * D, transcendentals=0, bytes_accessed=bytes_accessed),
    )(p, it)

    # (1, Bp) -> (Bp, 1) -> strip padding.
    return y_row.reshape(Bp, 1)[:B]


def _xavier_normal(key, shape):
    fan_out, fan_in = shape[0], shape[1]
    std = math.sqrt(2.0 / (fan_in + fan_out))
    return std * jax.random.normal(key, shape, dtype=jnp.float32)


if __name__ == "__main__":
    emb_dim = 32
    batch = 500          # exercises index-padding (500 -> 512) and a 2-step grid

    root = jax.random.PRNGKey(0)
    k_pl, k_it, k_w1, k_b1, k_w2, k_b2, k_idx_p, k_idx_i = jax.random.split(root, 8)

    # Deterministic synthetic parameters (shapes from the module __init__).
    playlist_emb = _xavier_normal(k_pl, (PLAYLISTS_SIZE, emb_dim))
    item_emb = _xavier_normal(k_it, (ITEM_SIZE, emb_dim))
    w1 = _xavier_normal(k_w1, (emb_dim // 2, emb_dim))   # fc1.weight (dead path, unused)
    b1 = 0.01 * jax.random.normal(k_b1, (emb_dim // 2,), dtype=jnp.float32)
    w2 = _xavier_normal(k_w2, (1, emb_dim // 2))         # fc2.weight (dead path, unused)
    b2 = 0.01 * jax.random.normal(k_b2, (1,), dtype=jnp.float32)

    # Input: integer id pairs [B, 2] -> (playlist_id, item_id).
    pl_ids = jax.random.randint(k_idx_p, (batch, 1), 0, PLAYLISTS_SIZE, dtype=jnp.int32)
    it_ids = jax.random.randint(k_idx_i, (batch, 1), 0, ITEM_SIZE, dtype=jnp.int32)
    x = jnp.concatenate([pl_ids, it_ids], axis=1)        # [B, 2]

    y = gmf_forward(x, playlist_emb, item_emb, w1, b1, w2, b2)
    y = jax.block_until_ready(y)

    # Pure-JAX reference for correctness.
    p_rows = jnp.take(playlist_emb, x[:, 0], axis=0)
    i_rows = jnp.take(item_emb, x[:, 1], axis=0)
    y_ref = jnp.sum(p_rows * i_rows, axis=-1, keepdims=True)

    assert y.shape == (batch, 1), y.shape
    assert jnp.allclose(y, y_ref, atol=1e-5, rtol=1e-5), (y, y_ref)

    print("KERNEL_OK")
</pallas_src>

<mosaic_0001>
module attributes {stable_mosaic.version = 11 : i64} {
  func.func @gmf_kernel(%arg0: i32, %arg1: memref<256x32xf32, #tpu.memory_space<vmem>>, %arg2: memref<256x32xf32, #tpu.memory_space<vmem>>, %arg3: memref<1x256xf32, #tpu.memory_space<vmem>>) attributes {dimension_semantics = [#tpu.dimension_semantics<parallel>], iteration_bounds = array<i64: 2>, scalar_prefetch = 0 : i64, scratch_operands = 0 : i64, tpu.core_type = #tpu.core_type<tc>, window_params = [{transform_indices = @transform_0, window_bounds = array<i64: 256, 32>}, {transform_indices = @transform_1, window_bounds = array<i64: 256, 32>}, {transform_indices = @transform_2, window_bounds = array<i64: 1, 256>}]} {
    %c0 = arith.constant 0 : index
    %c0_0 = arith.constant 0 : index
    %0 = vector.load %arg1[%c0, %c0_0] : memref<256x32xf32, #tpu.memory_space<vmem>>, vector<256x32xf32>
    %c0_1 = arith.constant 0 : index
    %c0_2 = arith.constant 0 : index
    %1 = vector.load %arg2[%c0_1, %c0_2] : memref<256x32xf32, #tpu.memory_space<vmem>>, vector<256x32xf32>
    %2 = arith.mulf %0, %1 : vector<256x32xf32>
    %cst = arith.constant 1.000000e+00 : f32
    %3 = vector.broadcast %cst : f32 to vector<1x32xf32>
    %4 = tpu.transpose %2, [1, 0] : vector<256x32xf32> -> vector<32x256xf32>
    %cst_3 = arith.constant dense<0.000000e+00> : vector<1x256xf32>
    %5 = tpu.matmul %3, %4, %cst_3 {dimension_numbers = #tpu.dot_dimension_numbers<[1], [0], [0], [1], [0, 0, 1, 1], [], []>} : vector<1x32xf32>, vector<32x256xf32>, vector<1x256xf32> -> vector<1x256xf32>
    %c0_4 = arith.constant 0 : index
    %c0_5 = arith.constant 0 : index
    %6 = vector.load %arg3[%c0_4, %c0_5] : memref<1x256xf32, #tpu.memory_space<vmem>>, vector<1x256xf32>
    tpu.vector_store %arg3[%c0_4, %c0_5], %5 {strides = array<i32>} : memref<1x256xf32, #tpu.memory_space<vmem>>, vector<1x256xf32>,
    return
  }
  func.func @transform_0(%arg0: i32) -> (i32, i32) {
    %c0_i32 = arith.constant 0 : i32
    %c0_i32_0 = arith.constant 0 : i32
    return %arg0, %c0_i32 : i32, i32
  }
  func.func @transform_1(%arg0: i32) -> (i32, i32) {
    %c0_i32 = arith.constant 0 : i32
    %c0_i32_0 = arith.constant 0 : i32
    return %arg0, %c0_i32 : i32, i32
  }
  func.func @transform_2(%arg0: i32) -> (i32, i32) {
    %c0_i32 = arith.constant 0 : i32
    %c0_i32_0 = arith.constant 0 : i32
    return %c0_i32, %arg0 : i32, i32
  }
}

</mosaic_0001>

<bundles_post_ra>
// kernel: tpu_custom_call.1
= control target key start
LH: loop header
LB: loop body
LE: loop exit
PB: predicated region body
PF: predicated region fallthrough
CT: control target
= control target key end

     0   :  { %7 = vsyncpa [#allocation3], 0  ;;  %s1008_s0 = inlined_call_operand.vmem [shape: f32[512,32], index: 0, kind: input, shape index: {}]   ;;  %s1009_s1 = inlined_call_operand.vmem [shape: f32[512,32], index: 1, kind: input, shape index: {}]   ;;  %s1010_s2 = inlined_call_operand.hbm [shape: f32[1,512], index: 2, kind: output, shape index: {}]  }
   0x1   :  { %9 = vsyncpa [#allocation3 + $0x1], 0  ;;  %s796_s9 = smov 0   ;;  %s798_s10 = smov 0  }
   0x2   :  { %s800_s11 = smov 0   ;;  %s802_s12 = smov 0  }
   0x3 LB: > { %s542_s13 = sadd.s32 4294967295, %s776_s12   ;;  %s543_s14 = sadd.s32 4294967294, %s776_s12   ;;  %s776_s12 = sphi %s802_s12, %s1018_s12   ;;  %s772_s11 = sphi %s800_s11, %s1017_s11   ;;  %s768_s10 = sphi %s798_s10, %s1016_s10   ;;  %s764_s9 = sphi %s796_s9, %s1015_s9  }
   0x4   : > { %s819_s15 = sadd.s32 1, %s776_s12   ;;  %s74_s16 = sadd.s32 1, %s772_s11 }
   0x5   : > { %s71_s17 = ssub.s32 %s776_s12, %s819_s15  ;;  %p84_p0 = scmp.ne.s32.totalorder %s772_s11, %s768_s10 }
   0x6   : > { %p72_p1 = scmp.eq.s32.totalorder %s71_s17, 0  ;;  %p85_p2 = scmp.eq.s32.totalorder %s542_s13, 1 }
   0x7   : > { %p90_p3 = scmp.ne.s32.totalorder %s768_s10, %s764_s9  ;;  %p91_p4 = scmp.eq.s32.totalorder %s543_s14, 1 }
   0x8   : > { %s829_s18 = scalar_select %p72_p1, %s772_s11, %s74_s16  }
   0x9   : > { %p831_p5 = por %p85_p2, %p84_p0  ;;  %p835_p6 = por %p91_p4, %p90_p3 }
   0xa   : > { %p546_p7 = scmp.ge.s32.totalorder %s776_s12, 1  ;;  %p127_p8 = scmp.lt.s32.totalorder %s776_s12, 3 }
   0xc   : > { %p128_p9 = pnand %p546_p7, %p127_p8 }
   0xd   : > { %s841_s21 = sshll.u32 (!%p128_p9), %s542_s13, 5  ;;  %vm263_vm0 = vcmask (!%p128_p9), 261120   ;;  %v778_v0 = vmov (!%p128_p9), 1.0   ;;  %s151_s30 = sand.u32 (!%p128_p9), 1, %s768_s10  }
   0xe   : > { %131 = sbr.rel (%p128_p9) target bundleno = 329 (0x149), region = 28  ;;  %p155_p10 = scmp.lt.s32.totalorder (!%p128_p9), %s841_s21, 63  ;;  %623 = vmatprep.mubr.msk.f32.mxu0 (!%p128_p9), %vm263_vm0, %v778_v0  ;;  %vm859_vm1 = vmpackc.low (!%p128_p9), %vm263_vm0, %vm263_vm0 }
   0xf   : > { %s547_s3 = sshll.u32 (!%p128_p9), %s151_s30, 1  ;;  %s966_s8 = scalar_lea.hbm (!%p128_p9), %s1010_s2, %s841_s21 }
  0x10   : > { %s153_s4 = scalar_lea.vmem (!%p128_p9), [#allocation2], %s547_s3  ;;  %s458_s13 = scalar_lea.sflag (!%p128_p9), [#allocation3], %s151_s30 }
  0x11   : > { %s472_s5 = sshll.u32 (!%p128_p9), %s153_s4, 4  ;;  %s780_s16 = smov (!%p128_p9), [#allocation2]   ;;  %s968_s5 = int_to_ptr.vmem [resolvable:$true] %s472_s5 }
  0x12   : > { %s714_s14 = scalar_lea.vmem (!%p128_p9), %s968_s5, 32  ;;  %s718_s17 = sshll.u32 (!%p128_p9), %s780_s16, 4  ;;  %s719_s17 = int_to_ptr.vmem [resolvable:$false] %s718_s17 }
  0x13   : > { %p715_p11 = scmp.ne.s32.totalorder (!%p128_p9), %s968_s5, %s714_s14  ;;  %p721_p0 = scmp.lt.s32.totalorder (!%p128_p9), %s968_s5, %s719_s17 }
  0x15   : > { %s156_s22 = scalar_select %p155_p10, %s841_s21, 63 }
  0x16   : > { %p716_p12 = pnand %p715_p11, %p831_p5 }
  0x17   : > { %s549_s23 = sshll.u32 %s156_s22, 3  ;;  %s720_s22 = scalar_lea.vmem %s719_s17, 64 }
  0x18   : > { %s850_s26 = scalar_lea.vmem %s1008_s0, %s549_s23  ;;  %s855_s29 = scalar_lea.vmem %s1009_s1, %s549_s23 }
  0x19   : > { %v183_v2 = vld [vmem:[%s850_s26 + $0x80] sm:$0xff]  ;;  %v184_v3 = vld [vmem:[%s850_s26 + $0x88] sm:$0xff]  ;;  %v185_v12 = vld [vmem:[%s850_s26 + $0x90] sm:$0xff]  ;;  %p717_p13 = pneg %p716_p12  ;;  %p722_p1 = scmp.lt.s32.totalorder %s720_s22, %s714_s14 }
  0x1a   : > { %v215_v4 = vld [vmem:[%s855_s29 + $0x80] sm:$0xff]  ;;  %v216_v5 = vld [vmem:[%s855_s29 + $0x88] sm:$0xff]  ;;  %v186_v15 = vld [vmem:[%s850_s26 + $0x98] sm:$0xff] }
  0x1b   : > { %v247_v6 = vmul.f32 %v215_v4, %v183_v2  ;;  %v167_v7 = vld [vmem:[%s850_s26] sm:$0xff]  ;;  %v168_v8 = vld [vmem:[%s850_s26 + $0x8] sm:$0xff]  ;;  %v248_v9 = vmul.f32 %v216_v5, %v184_v3  ;;  %v217_v16 = vld [vmem:[%s855_s29 + $0x90] sm:$0xff]  ;;  %p723_p2 = por %p722_p1, %p721_p0 }
  0x1c   : > { %v199_v10 = vld [vmem:[%s855_s29] sm:$0xff]  ;;  %v200_v11 = vld [vmem:[%s855_s29 + $0x8] sm:$0xff]  ;;  %v218_v17 = vld [vmem:[%s855_s29 + $0x98] sm:$0xff]  ;;  %v249_v19 = vmul.f32 %v217_v16, %v185_v12 }
  0x1d   : > { %v231_v13 = vmul.f32 %v199_v10, %v167_v7  ;;  %v232_v14 = vmul.f32 %v200_v11, %v168_v8  ;;  %v625_v18 = vpack.c.bf16 %v248_v9, %v247_v6  ;;  %v250_v20 = vmul.f32 %v218_v17, %v186_v15  ;;  %v169_v21 = vld [vmem:[%s850_s26 + $0x10] sm:$0xff]  ;;  %v170_v22 = vld [vmem:[%s850_s26 + $0x18] sm:$0xff]  ;;  %v187_v26 = vld [vmem:[%s850_s26 + $0xa0] sm:$0xff]  ;;  %p724_p3 = pnand %p723_p2, %p717_p13 }
  0x1e   : > { %v201_v23 = vld [vmem:[%s855_s29 + $0x10] sm:$0xff]  ;;  %v202_v25 = vld [vmem:[%s855_s29 + $0x18] sm:$0xff]  ;;  %v188_v27 = vld [vmem:[%s850_s26 + $0xa8] sm:$0xff] }
  0x1f   : > { %v628_v24 = vpack.c.bf16 %v232_v14, %v231_v13  ;;  %627 = vmatprep.subr.msk.bf16.mxu0 %vm859_vm1, %v625_v18  ;;  %v631_v28 = vpack.c.bf16 %v250_v20, %v249_v19  ;;  %v219_v29 = vld [vmem:[%s855_s29 + $0xa0] sm:$0xff]  ;;  %v220_v30 = vld [vmem:[%s855_s29 + $0xa8] sm:$0xff]  ;;  %v233_v31 = vmul.f32 %v201_v23, %v169_v21  ;;  %v234_v32 = vmul.f32 %v202_v25, %v170_v22  ;;  %v189_v41 = vld [vmem:[%s850_s26 + $0xb0] sm:$0xff] }
  0x20   : > { %v251_v33 = vmul.f32 %v219_v29, %v187_v26  ;;  %v252_v34 = vmul.f32 %v220_v30, %v188_v27  ;;  %v171_v36 = vld [vmem:[%s850_s26 + $0x20] sm:$0xff]  ;;  %v172_v37 = vld [vmem:[%s850_s26 + $0x28] sm:$0xff]  ;;  %v190_v42 = vld [vmem:[%s850_s26 + $0xb8] sm:$0xff] }
  0x21   : > { %630 = vmatpush3.bf16.xpose.msk.msra.mxu0 %vm859_vm1, %v628_v24  ;;  %v634_v35 = vpack.c.bf16 %v234_v32, %v233_v31  ;;  %v203_v39 = vld [vmem:[%s855_s29 + $0x20] sm:$0xff]  ;;  %v204_v40 = vld [vmem:[%s855_s29 + $0x28] sm:$0xff]  ;;  %v221_v43 = vld [vmem:[%s855_s29 + $0xb0] sm:$0xff] }
  0x22   : > { %633 = vmatprep.subr.msk.bf16.mxu0 %vm859_vm1, %v631_v28  ;;  %v637_v38 = vpack.c.bf16 %v252_v34, %v251_v33  ;;  %v222_v44 = vld [vmem:[%s855_s29 + $0xb8] sm:$0xff]  ;;  %v235_v45 = vmul.f32 %v203_v39, %v171_v36  ;;  %v236_v46 = vmul.f32 %v204_v40, %v172_v37  ;;  %v253_v47 = vmul.f32 %v221_v43, %v189_v41  ;;  %v173_v50 = vld [vmem:[%s850_s26 + $0x30] sm:$0xff]  ;;  %v191_v55 = vld [vmem:[%s850_s26 + $0xc0] sm:$0xff] }
  0x23   : > { %v254_v48 = vmul.f32 %v222_v44, %v190_v42  ;;  %v174_v51 = vld [vmem:[%s850_s26 + $0x38] sm:$0xff]  ;;  %v205_v53 = vld [vmem:[%s855_s29 + $0x30] sm:$0xff]  ;;  %v192_v56 = vld [vmem:[%s850_s26 + $0xc8] sm:$0xff] }
  0x24   : > { %v640_v49 = vpack.c.bf16 %v236_v46, %v235_v45  ;;  %v206_v54 = vld [vmem:[%s855_s29 + $0x38] sm:$0xff]  ;;  %v223_v57 = vld [vmem:[%s855_s29 + $0xc0] sm:$0xff]  ;;  %v224_v58 = vld [vmem:[%s855_s29 + $0xc8] sm:$0xff]  ;;  %v237_v59 = vmul.f32 %v205_v53, %v173_v50 }
  0x25   : > { %v643_v52 = vpack.c.bf16 %v254_v48, %v253_v47  ;;  %v238_v60 = vmul.f32 %v206_v54, %v174_v51  ;;  %v255_v61 = vmul.f32 %v223_v57, %v191_v55  ;;  %v256_v62 = vmul.f32 %v224_v58, %v192_v56  ;;  %v175_v2 = vld [vmem:[%s850_s26 + $0x40] sm:$0xff]  ;;  %v176_v3 = vld [vmem:[%s850_s26 + $0x48] sm:$0xff]  ;;  %v193_v7 = vld [vmem:[%s850_s26 + $0xd0] sm:$0xff] }
  0x26   : > { %v207_v5 = vld [vmem:[%s855_s29 + $0x40] sm:$0xff]  ;;  %v208_v6 = vld [vmem:[%s855_s29 + $0x48] sm:$0xff]  ;;  %v194_v8 = vld [vmem:[%s850_s26 + $0xd8] sm:$0xff]  ;;  %v440_v54 = vlaneseq }
  0x27   : > { %v646_v63 = vpack.c.bf16 %v238_v60, %v237_v59  ;;  %v649_v4 = vpack.c.bf16 %v256_v62, %v255_v61  ;;  %v225_v9 = vld [vmem:[%s855_s29 + $0xd0] sm:$0xff]  ;;  %v226_v10 = vld [vmem:[%s855_s29 + $0xd8] sm:$0xff]  ;;  %v239_v11 = vmul.f32 %v207_v5, %v175_v2  ;;  %v240_v12 = vmul.f32 %v208_v6, %v176_v3  ;;  %v195_v21 = vld [vmem:[%s850_s26 + $0xe0] sm:$0xff] }
  0x28   : > { %v257_v13 = vmul.f32 %v225_v9, %v193_v7  ;;  %v258_v14 = vmul.f32 %v226_v10, %v194_v8  ;;  %v177_v16 = vld [vmem:[%s850_s26 + $0x50] sm:$0xff]  ;;  %v178_v17 = vld [vmem:[%s850_s26 + $0x58] sm:$0xff]  ;;  %v196_v22 = vld [vmem:[%s850_s26 + $0xe8] sm:$0xff]  ;;  %v441_v56 = vshrl.u32 %v440_v54, 7  ;;  %vm454_vm2 = vcmp.lt.s32.totalorder %v440_v54, 256 }
  0x29   : > { %636 = vmatpush3.bf16.xpose.msk.msra.mxu0 %vm859_vm1, %v634_v35  ;;  %v652_v15 = vpack.c.bf16 %v240_v12, %v239_v11  ;;  %v209_v19 = vld [vmem:[%s855_s29 + $0x50] sm:$0xff]  ;;  %v210_v20 = vld [vmem:[%s855_s29 + $0x58] sm:$0xff]  ;;  %v227_v23 = vld [vmem:[%s855_s29 + $0xe0] sm:$0xff] }
  0x2a   : > { %639 = vmatprep.subr.msk.bf16.mxu0 %vm859_vm1, %v637_v38  ;;  %v655_v18 = vpack.c.bf16 %v258_v14, %v257_v13  ;;  %v228_v24 = vld [vmem:[%s855_s29 + $0xe8] sm:$0xff]  ;;  %v241_v25 = vmul.f32 %v209_v19, %v177_v16  ;;  %v242_v26 = vmul.f32 %v210_v20, %v178_v17  ;;  %v259_v27 = vmul.f32 %v227_v23, %v195_v21  ;;  %v179_v30 = vld [vmem:[%s850_s26 + $0x60] sm:$0xff]  ;;  %v197_v35 = vld [vmem:[%s850_s26 + $0xf0] sm:$0xff] }
  0x2b   : > { %v260_v28 = vmul.f32 %v228_v24, %v196_v22  ;;  %v180_v31 = vld [vmem:[%s850_s26 + $0x68] sm:$0xff]  ;;  %v211_v33 = vld [vmem:[%s855_s29 + $0x60] sm:$0xff]  ;;  %v198_v36 = vld [vmem:[%s850_s26 + $0xf8] sm:$0xff] }
  0x2c   : > { %v658_v29 = vpack.c.bf16 %v242_v26, %v241_v25  ;;  %v212_v34 = vld [vmem:[%s855_s29 + $0x68] sm:$0xff]  ;;  %v229_v37 = vld [vmem:[%s855_s29 + $0xf0] sm:$0xff]  ;;  %v230_v38 = vld [vmem:[%s855_s29 + $0xf8] sm:$0xff]  ;;  %v243_v39 = vmul.f32 %v211_v33, %v179_v30 }
  0x2d   : > { %v661_v32 = vpack.c.bf16 %v260_v28, %v259_v27  ;;  %v244_v40 = vmul.f32 %v212_v34, %v180_v31  ;;  %v261_v41 = vmul.f32 %v229_v37, %v197_v35  ;;  %v262_v42 = vmul.f32 %v230_v38, %v198_v36  ;;  %v181_v44 = vld [vmem:[%s850_s26 + $0x70] sm:$0xff]  ;;  %v182_v46 = vld [vmem:[%s850_s26 + $0x78] sm:$0xff] }
  0x2e   : > { %v213_v47 = vld [vmem:[%s855_s29 + $0x70] sm:$0xff]  ;;  %v214_v48 = vld [vmem:[%s855_s29 + $0x78] sm:$0xff] }
  0x2f   : > { %v664_v43 = vpack.c.bf16 %v244_v40, %v243_v39  ;;  %v667_v45 = vpack.c.bf16 %v262_v42, %v261_v41  ;;  %v246_v50 = vmul.f32 %v214_v48, %v182_v46 }
  0x31   : > { %642 = vmatpush3.bf16.xpose.msk.msra.mxu0 %vm859_vm1, %v640_v49  ;;  %v245_v49 = vmul.f32 %v213_v47, %v181_v44 }
  0x32   : > { %645 = vmatprep.subr.msk.bf16.mxu0 %vm859_vm1, %v643_v52  ;;  %v779_v52 = vmov 1966171168  }
  0x33   : > { %v670_v51 = vpack.c.bf16 %v246_v50, %v245_v49  ;;  %v438_v53 = vunpack.c.l.s4 %v779_v52 }
  0x35   : > { %v439_v55 = vunpack.c.0.s8 %v438_v53 }
  0x37   : > { %v442_v58 = vsub.s32 %v439_v55, %v441_v56 }
  0x39   : > { %648 = vmatpush3.bf16.xpose.msk.msra.mxu0 %vm859_vm1, %v646_v63 }
  0x3a   : > { %651 = vmatprep.subr.msk.bf16.mxu0 %vm859_vm1, %v649_v4 }
  0x41   : > { %654 = vmatpush3.bf16.xpose.msk.msra.mxu0 %vm859_vm1, %v652_v15 }
  0x42   : > { %657 = vmatprep.subr.msk.bf16.mxu0 %vm859_vm1, %v655_v18 }
  0x49   : > { %660 = vmatpush3.bf16.xpose.msk.msra.mxu0 %vm859_vm1, %v658_v29 }
  0x4a   : > { %663 = vmatprep.subr.msk.bf16.mxu0 %vm859_vm1, %v661_v32 }
  0x51   : > { %666 = vmatpush3.bf16.xpose.msk.msra.mxu0 %vm859_vm1, %v664_v43 }
  0x52   : > { %669 = vmatprep.subr.msk.bf16.mxu0 %vm859_vm1, %v667_v45 }
  0x59   : > { %672 = vmatpush3.bf16.xpose.msk.msra.mxu0 %vm859_vm1, %v670_v51 }
  0x60   : > { %624 = vmatmul.mubr.msk.f32.vlgmr.msra.gmra.mrb[0].mxu0 %vm263_vm0, %v778_v0 }
 0x133   : > { %v429_v57 = vpop.f32.mrb[0].mxu0 }
 0x134   : > { %v431_v59 = vpop.f32.mrb[1].mxu0 }
 0x135   : > { %v436_v60 = vcombine.low %v429_v57, %v431_v59 }
 0x137   : > { %v443_v1 = vrot.slane %v436_v60, %v442_v58 }
 0x139   : > { %v450_v61 = vrot.slane %v443_v1, %v442_v58 }
 0x13b   : > { %456 = vst.msk [vmem:[%s153_s4] sm:$0x3] %vm454_vm2, %v450_v61 }
 0x13c   : > { %727 = shalt.err (!%p724_p3)
}
 0x13d   : > { %s728_s21 = scalar_lea.hbm %s966_s8, 32  ;;  %s732_s25 = scalar_lea.hbm %s1010_s2, 64 }
 0x13e   : > { %p729_p4 = scmp.ne.s32.totalorder %s966_s8, %s728_s21  ;;  %p733_p9 = scmp.lt.u32.totalorder %s966_s8, %s1010_s2 }
 0x13f   : > { %p734_p10 = scmp.lt.u32.totalorder %s732_s25, %s728_s21  ;;  %p736_p12 = scmp.lt.u32.totalorder %s728_s21, %s966_s8 }
 0x140   : > { %p730_p7 = pnand %p729_p4, %p831_p5 }
 0x141   : > { %p735_p11 = por %p734_p10, %p733_p9 }
 0x142   : > { %p731_p8 = pneg %p730_p7 }
 0x143   : > { %p737_p13 = por %p736_p12, %p735_p11 }
 0x145   : > { %p738_p0 = pnand %p737_p13, %p731_p8 }
 0x147   : > { %741 = shalt.err (!%p738_p0)
}
 0x148   : > { %673 = dma.vmem_to_hbm [thread:$0]  (%p831_p5), %s968_s5, 32, %s966_s8, %s458_s13  }
 0x149 PF: > { %p679_p1 = scmp.ge.s32.totalorder %s776_s12, 2  ;;  %s484_s28 = sand.u32 1, %s764_s9  }
 0x14a   : > { %s485_s29 = scalar_lea.sflag [#allocation3], %s484_s28 }
 0x14b   : > { %p676_p2 = pnand %p679_p1, %p835_p6 }
 0x14d   : > { %759 = dma.done.wait (!%p676_p2), %s485_s29, 32  }
 0x14e   : > { %761 = vsyncadd (!%p676_p2), %s485_s29, 4294967264  ;;  %p12_p3 = scmp.ge.s32.totalorder %s819_s15, 4   ;;  %s1015_s9 = smov %s768_s10 }
 0x14f   : > { %s1016_s10 = smov %s772_s11  ;;  %s1017_s11 = smov %s829_s18 }
 0x150   : > { %s1018_s12 = smov %s819_s15  ;;  %14 = sbr.rel (!%p12_p3) target bundleno = 3 (0x3), region = 66 }
 0x157   :  { %490 = vsyncpa [#allocation3], 1 }
 0x158   :  { %492 = vsyncpa [#allocation3 + $0x1], 1 }

</bundles_post_ra>
